<compile_context>
chip_gen: v7x
topology: tpu7x:2x2x1
jax: 0.10.0
libtpu: 0.0.40
codegen_flags: <defaults>
</compile_context>

<pallas_src>
import functools
import math

import jax
import jax.numpy as jnp
from jax.experimental import pallas as pl
from jax.experimental.pallas import tpu as pltpu

_HIDDEN = 128
_LANES = 128  # lane-dense output slab width
_HALF_LOG_2PI = 0.5 * math.log(2.0 * math.pi)


def _round_up(x: int, m: int) -> int:
    return (x + m - 1) // m * m


def actor_kernel(x_ref, eps_ref, w1_ref, b1_ref, wh_ref, bh_ref, amax_ref,
                 out_ref, *, action_dim: int):
    A = action_dim
    TB, lanes = out_ref.shape

    x = x_ref[...]                                     # [TB, S]
    eps = eps_ref[...]                                 # [TB, A]
    # single hoisted broadcast of action_max, reused three times below
    amax = jnp.broadcast_to(amax_ref[...], (TB, A))    # [TB, A]

    # hidden layer: Linear(S, 128) + ReLU
    h = jnp.dot(x, w1_ref[...], preferred_element_type=jnp.float32) + b1_ref[...]
    h = jnp.maximum(h, 0.0)                            # [TB, 128]

    # fused mean/std heads: single Linear(128, 2A)
    heads = jnp.dot(h, wh_ref[...], preferred_element_type=jnp.float32) + bh_ref[...]
    mean = heads[:, :A]                                # [TB, A]
    log_std = heads[:, A:2 * A]                        # [TB, A]
    std = jnp.exp(log_std)

    # rsample(): x_t = mean + std * eps
    x_t = mean + std * eps

    # one fused tanh over [x_t | mean]  -> a single EUP pass covers both
    pre = jnp.concatenate([x_t, mean], axis=1)         # [TB, 2A]
    th = jnp.tanh(pre)
    y_t = th[:, :A]                                    # tanh(x_t)
    tanh_mean = th[:, A:2 * A]                         # tanh(mean)

    action = y_t * amax
    atest = tanh_mean * amax

    # Normal(mean, std).log_prob(x_t): z = (x_t - mean)/std == eps exactly
    lp = -0.5 * (eps * eps) - log_std - _HALF_LOG_2PI
    lp = lp - jnp.log(amax * (1.0 - y_t * y_t) + 1e-6)
    logp = jnp.sum(lp, axis=1, keepdims=True)          # [TB, 1]

    # build the full lane-dense slab in registers; one unmasked full store
    pad = jnp.zeros((TB, lanes - 2 * A - 1), jnp.float32)
    out_ref[...] = jnp.concatenate([action, atest, logp, pad], axis=1)


def actor_forward_slab(x, params, eps):
    """Returns the raw [B, 128] slab: cols [0:A]=action, [A:2A]=action_test,
    [2A]=log_prob.  Consume this directly downstream to avoid re-reading."""
    B, S = x.shape
    A = params["amax"].shape[1]
    assert 2 * A + 1 <= _LANES, "slab packing requires 2*action_dim+1 <= 128"

    # Batch tile: one step for small B; for large B pick a tile that gives
    # >=2 grid steps so v7x can shard the 'parallel' axis across both TCs.
    if B <= 256:
        TB = min(256, _round_up(B, 8))
    else:
        TB = min(1024, _round_up(pl.cdiv(B, 2), 8))
    B_pad = _round_up(B, TB)
    if B_pad != B:
        x = jnp.pad(x, ((0, B_pad - B), (0, 0)))
        eps = jnp.pad(eps, ((0, B_pad - B), (0, 0)))
    grid = (B_pad // TB,)

    bytes_in = 4 * (x.size + eps.size + params["w1"].size + params["b1"].size
                    + params["wh"].size + params["bh"].size + params["amax"].size)
    cost = pl.CostEstimate(
        flops=2 * B_pad * (S * _HIDDEN + _HIDDEN * 2 * A),
        transcendentals=4 * B_pad * A,               # exp + fused tanh(2A) + log
        bytes_accessed=bytes_in + 4 * B_pad * _LANES,
    )

    slab = pl.pallas_call(
        functools.partial(actor_kernel, action_dim=A),
        out_shape=jax.ShapeDtypeStruct((B_pad, _LANES), jnp.float32),
        grid=grid,
        in_specs=[
            pl.BlockSpec((TB, S), lambda i: (i, 0)),            # x
            pl.BlockSpec((TB, A), lambda i: (i, 0)),            # eps
            pl.BlockSpec((S, _HIDDEN), lambda i: (0, 0)),       # w1 (VMEM-resident)
            pl.BlockSpec((1, _HIDDEN), lambda i: (0, 0)),       # b1
            pl.BlockSpec((_HIDDEN, 2 * A), lambda i: (0, 0)),   # fused heads W
            pl.BlockSpec((1, 2 * A), lambda i: (0, 0)),         # fused heads b
            pl.BlockSpec((1, A), lambda i: (0, 0)),             # action_max
        ],
        out_specs=pl.BlockSpec((TB, _LANES), lambda i: (i, 0)),
        compiler_params=pltpu.CompilerParams(
            dimension_semantics=("parallel",)),
        cost_estimate=cost,
    )(x, eps, params["w1"], params["b1"], params["wh"], params["bh"],
      params["amax"])
    return slab[:B]


def actor_forward(x, params, eps):
    """PyTorch-compatible interface: (action, log_prob, action_test).
    Keep this whole function inside one jit next to its consumer so the slab
    slices fuse downstream instead of round-tripping through HBM."""
    A = params["amax"].shape[1]
    slab = actor_forward_slab(x, params, eps)
    action = slab[:, 0:A]
    action_test = slab[:, A:2 * A]
    log_prob = slab[:, 2 * A:2 * A + 1]
    return action, log_prob, action_test


def init_params(key, state_dim, action_dim, action_max):
    """Deterministic PyTorch-like (uniform) init; weights stored as [in, out];
    mean/std head weights concatenated into one [128, 2A] matrix."""
    ks = jax.random.split(key, 6)
    hidden = _HIDDEN

    def lin(kw, kb, fan_in, fan_out):
        bound = 1.0 / math.sqrt(fan_in)
        w = jax.random.uniform(kw, (fan_in, fan_out), jnp.float32, -bound, bound)
        b = jax.random.uniform(kb, (1, fan_out), jnp.float32, -bound, bound)
        return w, b

    w1, b1 = lin(ks[0], ks[1], state_dim, hidden)
    wm, bm = lin(ks[2], ks[3], hidden, action_dim)
    ws, bs = lin(ks[4], ks[5], hidden, action_dim)
    wh = jnp.concatenate([wm, ws], axis=1)           # [128, 2A]
    bh = jnp.concatenate([bm, bs], axis=1)           # [1, 2A]
    amax = jnp.asarray(action_max, dtype=jnp.float32).reshape(1, action_dim)
    return {"w1": w1, "b1": b1, "wh": wh, "bh": bh, "amax": amax}


def _reference(x, params, eps):
    """Pure-JAX reference of the PyTorch forward (for correctness check)."""
    A = params["amax"].shape[1]
    h = jnp.maximum(x @ params["w1"] + params["b1"], 0.0)
    heads = h @ params["wh"] + params["bh"]
    mean, log_std = heads[:, :A], heads[:, A:]
    std = jnp.exp(log_std)
    x_t = mean + std * eps
    y_t = jnp.tanh(x_t)
    amax = params["amax"]
    action = y_t * amax
    z = (x_t - mean) / std
    log_prob = -0.5 * z * z - log_std - _HALF_LOG_2PI
    log_prob = log_prob - jnp.log(amax * (1.0 - y_t * y_t) + 1e-6)
    log_prob = jnp.sum(log_prob, axis=1, keepdims=True)
    atest = jnp.tanh(mean) * amax
    return action, log_prob, atest


if __name__ == "__main__":
    key = jax.random.PRNGKey(0)
    k_x, k_p, k_eps = jax.random.split(key, 3)

    batch = 8
    state_dim = 32
    action_dim = 4
    action_max = [1.0, 2.0, 0.5, 1.5]

    x = jax.random.normal(k_x, (batch, state_dim), dtype=jnp.float32)
    params = init_params(k_p, state_dim, action_dim, action_max)
    # rsample() reparameterization noise, deterministic given PRNGKey(0).
    eps = jax.random.normal(k_eps, (batch, action_dim), dtype=jnp.float32)

    fwd = jax.jit(actor_forward)
    action, log_prob, action_test = fwd(x, params, eps)
    jax.block_until_ready((action, log_prob, action_test))

    assert action.shape == (batch, action_dim)
    assert log_prob.shape == (batch, 1)
    assert action_test.shape == (batch, action_dim)

    ra, rl, rt = _reference(x, params, eps)
    assert jnp.allclose(action, ra, rtol=1e-4, atol=1e-4)
    assert jnp.allclose(log_prob, rl, rtol=1e-4, atol=1e-4)
    assert jnp.allclose(action_test, rt, rtol=1e-4, atol=1e-4)
    print("KERNEL_OK")
</pallas_src>

<mosaic_0001>
module attributes {stable_mosaic.version = 11 : i64} {
  func.func @actor_kernel(%arg0: i32, %arg1: memref<8x32xf32, #tpu.memory_space<vmem>>, %arg2: memref<8x4xf32, #tpu.memory_space<vmem>>, %arg3: memref<32x128xf32, #tpu.memory_space<vmem>>, %arg4: memref<1x128xf32, #tpu.memory_space<vmem>>, %arg5: memref<128x8xf32, #tpu.memory_space<vmem>>, %arg6: memref<1x8xf32, #tpu.memory_space<vmem>>, %arg7: memref<1x4xf32, #tpu.memory_space<vmem>>, %arg8: memref<8x128xf32, #tpu.memory_space<vmem>>) attributes {dimension_semantics = [#tpu.dimension_semantics<parallel>], iteration_bounds = array<i64: 1>, scalar_prefetch = 0 : i64, scratch_operands = 0 : i64, tpu.core_type = #tpu.core_type<tc>, window_params = [{transform_indices = @transform_0, window_bounds = array<i64: 8, 32>}, {transform_indices = @transform_1, window_bounds = array<i64: 8, 4>}, {pipeline_mode = #tpu.pipeline_mode<synchronous>, transform_indices = @transform_2, window_bounds = array<i64: 32, 128>}, {pipeline_mode = #tpu.pipeline_mode<synchronous>, transform_indices = @transform_3, window_bounds = array<i64: 1, 128>}, {pipeline_mode = #tpu.pipeline_mode<synchronous>, transform_indices = @transform_4, window_bounds = array<i64: 128, 8>}, {pipeline_mode = #tpu.pipeline_mode<synchronous>, transform_indices = @transform_5, window_bounds = array<i64: 1, 8>}, {pipeline_mode = #tpu.pipeline_mode<synchronous>, transform_indices = @transform_6, window_bounds = array<i64: 1, 4>}, {transform_indices = @transform_7, window_bounds = array<i64: 8, 128>}]} {
    %c0 = arith.constant 0 : index
    %c0_0 = arith.constant 0 : index
    %0 = vector.load %arg1[%c0, %c0_0] : memref<8x32xf32, #tpu.memory_space<vmem>>, vector<8x32xf32>
    %c0_1 = arith.constant 0 : index
    %c0_2 = arith.constant 0 : index
    %1 = vector.load %arg2[%c0_1, %c0_2] : memref<8x4xf32, #tpu.memory_space<vmem>>, vector<8x4xf32>
    %c0_3 = arith.constant 0 : index
    %c0_4 = arith.constant 0 : index
    %2 = vector.load %arg7[%c0_3, %c0_4] : memref<1x4xf32, #tpu.memory_space<vmem>>, vector<1x4xf32>
    %3 = vector.shape_cast %2 : vector<1x4xf32> to vector<1x4xf32>
    %4 = vector.broadcast %3 : vector<1x4xf32> to vector<8x4xf32>
    %c0_5 = arith.constant 0 : index
    %c0_6 = arith.constant 0 : index
    %5 = vector.load %arg3[%c0_5, %c0_6] : memref<32x128xf32, #tpu.memory_space<vmem>>, vector<32x128xf32>
    %cst = arith.constant dense<0.000000e+00> : vector<8x128xf32>
    %6 = tpu.matmul %0, %5, %cst {dimension_numbers = #tpu.dot_dimension_numbers<[1], [0], [0], [1], [0, 0, 1, 1], [], []>} : vector<8x32xf32>, vector<32x128xf32>, vector<8x128xf32> -> vector<8x128xf32>
    %c0_7 = arith.constant 0 : index
    %c0_8 = arith.constant 0 : index
    %7 = vector.load %arg4[%c0_7, %c0_8] : memref<1x128xf32, #tpu.memory_space<vmem>>, vector<1x128xf32>
    %8 = vector.broadcast %7 : vector<1x128xf32> to vector<8x128xf32>
    %9 = arith.addf %6, %8 : vector<8x128xf32>
    %cst_9 = arith.constant 0.000000e+00 : f32
    %10 = vector.broadcast %cst_9 : f32 to vector<8x128xf32>
    %11 = arith.maximumf %9, %10 : vector<8x128xf32>
    %c0_10 = arith.constant 0 : index
    %c0_11 = arith.constant 0 : index
    %12 = vector.load %arg5[%c0_10, %c0_11] : memref<128x8xf32, #tpu.memory_space<vmem>>, vector<128x8xf32>
    %cst_12 = arith.constant dense<0.000000e+00> : vector<8x8xf32>
    %13 = tpu.matmul %11, %12, %cst_12 {dimension_numbers = #tpu.dot_dimension_numbers<[1], [0], [0], [1], [0, 0, 1, 1], [], []>} : vector<8x128xf32>, vector<128x8xf32>, vector<8x8xf32> -> vector<8x8xf32>
    %c0_13 = arith.constant 0 : index
    %c0_14 = arith.constant 0 : index
    %14 = vector.load %arg6[%c0_13, %c0_14] : memref<1x8xf32, #tpu.memory_space<vmem>>, vector<1x8xf32>
    %15 = vector.broadcast %14 : vector<1x8xf32> to vector<8x8xf32>
    %16 = arith.addf %13, %15 : vector<8x8xf32>
    %17 = vector.extract_strided_slice %16 {offsets = [0, 0], sizes = [8, 4], strides = [1, 1]} : vector<8x8xf32> to vector<8x4xf32>
    %18 = vector.extract_strided_slice %16 {offsets = [0, 4], sizes = [8, 4], strides = [1, 1]} : vector<8x8xf32> to vector<8x4xf32>
    %19 = math.exp %18 : vector<8x4xf32>
    %20 = arith.mulf %19, %1 : vector<8x4xf32>
    %21 = arith.addf %17, %20 : vector<8x4xf32>
    %22 = tpu.concatenate %21, %17 in 1 : vector<8x4xf32>, vector<8x4xf32> -> vector<8x8xf32>
    %23 = math.tanh %22 : vector<8x8xf32>
    %24 = vector.extract_strided_slice %23 {offsets = [0, 0], sizes = [8, 4], strides = [1, 1]} : vector<8x8xf32> to vector<8x4xf32>
    %25 = vector.extract_strided_slice %23 {offsets = [0, 4], sizes = [8, 4], strides = [1, 1]} : vector<8x8xf32> to vector<8x4xf32>
    %26 = arith.mulf %24, %4 : vector<8x4xf32>
    %27 = arith.mulf %25, %4 : vector<8x4xf32>
    %28 = arith.mulf %1, %1 : vector<8x4xf32>
    %cst_15 = arith.constant -5.000000e-01 : f32
    %29 = vector.broadcast %cst_15 : f32 to vector<8x4xf32>
    %30 = arith.mulf %29, %28 : vector<8x4xf32>
    %31 = arith.subf %30, %18 : vector<8x4xf32>
    %cst_16 = arith.constant 0.918938517 : f32
    %32 = vector.broadcast %cst_16 : f32 to vector<8x4xf32>
    %33 = arith.subf %31, %32 : vector<8x4xf32>
    %34 = arith.mulf %24, %24 : vector<8x4xf32>
    %cst_17 = arith.constant 1.000000e+00 : f32
    %35 = vector.broadcast %cst_17 : f32 to vector<8x4xf32>
    %36 = arith.subf %35, %34 : vector<8x4xf32>
    %37 = arith.mulf %4, %36 : vector<8x4xf32>
    %cst_18 = arith.constant 9.99999997E-7 : f32
    %38 = vector.broadcast %cst_18 : f32 to vector<8x4xf32>
    %39 = arith.addf %37, %38 : vector<8x4xf32>
    %40 = math.log %39 : vector<8x4xf32>
    %41 = arith.subf %33, %40 : vector<8x4xf32>
    %cst_19 = arith.constant dense<0.000000e+00> : vector<8xf32>
    %42 = vector.multi_reduction <add>, %41, %cst_19 [1] : vector<8x4xf32> to vector<8xf32>
    %43 = vector.shape_cast %42 : vector<8xf32> to vector<8x1xf32>
    %cst_20 = arith.constant 0.000000e+00 : f32
    %44 = vector.broadcast %cst_20 : f32 to vector<8x119xf32>
    %45 = tpu.concatenate %26, %27, %43, %44 in 1 : vector<8x4xf32>, vector<8x4xf32>, vector<8x1xf32>, vector<8x119xf32> -> vector<8x128xf32>
    %c0_21 = arith.constant 0 : index
    %c0_22 = arith.constant 0 : index
    %46 = vector.load %arg8[%c0_21, %c0_22] : memref<8x128xf32, #tpu.memory_space<vmem>>, vector<8x128xf32>
    tpu.vector_store %arg8[%c0_21, %c0_22], %45 {strides = array<i32>} : memref<8x128xf32, #tpu.memory_space<vmem>>, vector<8x128xf32>,
    return
  }
  func.func @transform_0(%arg0: i32) -> (i32, i32) {
    %c0_i32 = arith.constant 0 : i32
    %c0_i32_0 = arith.constant 0 : i32
    return %arg0, %c0_i32 : i32, i32
  }
  func.func @transform_1(%arg0: i32) -> (i32, i32) {
    %c0_i32 = arith.constant 0 : i32
    %c0_i32_0 = arith.constant 0 : i32
    return %arg0, %c0_i32 : i32, i32
  }
  func.func @transform_2(%arg0: i32) -> (i32, i32) {
    %c0_i32 = arith.constant 0 : i32
    %c0_i32_0 = arith.constant 0 : i32
    %c0_i32_1 = arith.constant 0 : i32
    return %c0_i32, %c0_i32_0 : i32, i32
  }
  func.func @transform_3(%arg0: i32) -> (i32, i32) {
    %c0_i32 = arith.constant 0 : i32
    %c0_i32_0 = arith.constant 0 : i32
    %c0_i32_1 = arith.constant 0 : i32
    return %c0_i32, %c0_i32_0 : i32, i32
  }
  func.func @transform_4(%arg0: i32) -> (i32, i32) {
    %c0_i32 = arith.constant 0 : i32
    %c0_i32_0 = arith.constant 0 : i32
    %c0_i32_1 = arith.constant 0 : i32
    return %c0_i32, %c0_i32_0 : i32, i32
  }
  func.func @transform_5(%arg0: i32) -> (i32, i32) {
    %c0_i32 = arith.constant 0 : i32
    %c0_i32_0 = arith.constant 0 : i32
    %c0_i32_1 = arith.constant 0 : i32
    return %c0_i32, %c0_i32_0 : i32, i32
  }
  func.func @transform_6(%arg0: i32) -> (i32, i32) {
    %c0_i32 = arith.constant 0 : i32
    %c0_i32_0 = arith.constant 0 : i32
    %c0_i32_1 = arith.constant 0 : i32
    return %c0_i32, %c0_i32_0 : i32, i32
  }
  func.func @transform_7(%arg0: i32) -> (i32, i32) {
    %c0_i32 = arith.constant 0 : i32
    %c0_i32_0 = arith.constant 0 : i32
    return %arg0, %c0_i32 : i32, i32
  }
}

</mosaic_0001>

<bundles_post_ra>
// kernel: actor_forward.1
= control target key start
LH: loop header
LB: loop body
LE: loop exit
PB: predicated region body
PF: predicated region fallthrough
CT: control target
= control target key end

     0   :  { %v379_v0 = vmov 0.0|0.0   ;;  %vm380_vm0 = vmmov 0   ;;  %v381_v4 = vmov 0.0   ;;  %vm46_vm1 = vcmask 261120   ;;  %s382_s19 = smov 4   ;;  %s505_s2 = inlined_call_operand.vmem [shape: f32[32,128], index: 2, kind: input, shape index: {}]   ;;  %s506_s4 = inlined_call_operand.vmem [shape: f32[128,8], index: 4, kind: input, shape index: {}]   ;;  %s507_s0 = inlined_call_operand.vmem [shape: f32[8,32], index: 0, kind: input, shape index: {}]   ;;  %s508_s1 = inlined_call_operand.vmem [shape: f32[8,4], index: 1, kind: input, shape index: {}]   ;;  %s509_s3 = inlined_call_operand.vmem [shape: f32[1,128], index: 3, kind: input, shape index: {}]   ;;  %s510_s5 = inlined_call_operand.vmem [shape: f32[1,8], index: 5, kind: input, shape index: {}]   ;;  %s511_s6 = inlined_call_operand.vmem [shape: f32[1,4], index: 6, kind: input, shape index: {}]   ;;  %s512_s7 = inlined_call_operand.vmem [shape: f32[8,128], index: 7, kind: output, shape index: {}]  }
   0x1   :  { %338 = vmatprep.subr.bf16.mxu0 %v379_v0  ;;  %v35_v1 = vld [vmem:[%s505_s2] sm:$0xff]  ;;  %v36_v2 = vld [vmem:[%s505_s2 + $0x8] sm:$0xff]  ;;  %v37_v3 = vld [vmem:[%s505_s2 + $0x10] sm:$0xff]  ;;  %300 = vmatprep.mubr.msk.f32.mxu0 %vm380_vm0, %v381_v4  ;;  %vm230_vm2 = vcmask 31744   ;;  %vm256_vm3 = vcmask 64512   ;;  %vm258_vm4 = vcmask 72704  }
   0x2   :  { %v339_v5 = vpack.c.bf16 %v36_v2, %v35_v1  ;;  %v38_v6 = vld [vmem:[%s505_s2 + $0x18] sm:$0xff]  ;;  %344 = vmatprep.subr.bf16.mxu1 %v379_v0  ;;  %v121_v7 = vld [vmem:[%s506_s4] sm:$0xff]  ;;  %335 = vmatprep.mubr.msk.f32.mxu1 %vm380_vm0, %v381_v4  ;;  %v122_v8 = vld [vmem:[%s506_s4 + $0x8] sm:$0xff] }
   0x3   :  { %v123_v9 = vld [vmem:[%s506_s4 + $0x10] sm:$0xff]  ;;  %v124_v10 = vld [vmem:[%s506_s4 + $0x18] sm:$0xff]  ;;  %v342_v11 = vpack.c.bf16 %v38_v6, %v37_v3  ;;  %v345_v12 = vpack.c.bf16 %v122_v8, %v121_v7  ;;  %v125_v14 = vld [vmem:[%s506_s4 + $0x20] sm:$0xff] }
   0x4   :  { %340 = vmatpush3.bf16.msra.mxu0 %v339_v5  ;;  %v348_v13 = vpack.c.bf16 %v124_v10, %v123_v9  ;;  %v126_v15 = vld [vmem:[%s506_s4 + $0x28] sm:$0xff]  ;;  %v26_v16 = vld [vmem:[%s507_s0] sm:$0xff]  ;;  %v127_v18 = vld [vmem:[%s506_s4 + $0x30] sm:$0xff] }
   0x5   :  { %341 = vmatprep.subr.bf16.mxu0 %v379_v0  ;;  %346 = vmatpush3.bf16.msra.mxu1 %v345_v12  ;;  %v351_v17 = vpack.c.bf16 %v126_v15, %v125_v14  ;;  %v128_v19 = vld [vmem:[%s506_s4 + $0x38] sm:$0xff]  ;;  %v129_v21 = vld [vmem:[%s506_s4 + $0x40] sm:$0xff]  ;;  %v130_v22 = vld [vmem:[%s506_s4 + $0x48] sm:$0xff] }
   0x6   :  { %347 = vmatprep.subr.bf16.mxu1 %v379_v0  ;;  %v354_v20 = vpack.c.bf16 %v128_v19, %v127_v18  ;;  %v357_v23 = vpack.c.bf16 %v130_v22, %v129_v21  ;;  %v131_v24 = vld [vmem:[%s506_s4 + $0x50] sm:$0xff]  ;;  %v132_v25 = vld [vmem:[%s506_s4 + $0x58] sm:$0xff]  ;;  %v133_v27 = vld [vmem:[%s506_s4 + $0x60] sm:$0xff] }
   0x7   :  { %v360_v26 = vpack.c.bf16 %v132_v25, %v131_v24  ;;  %v134_v28 = vld [vmem:[%s506_s4 + $0x68] sm:$0xff]  ;;  %v135_v30 = vld [vmem:[%s506_s4 + $0x70] sm:$0xff]  ;;  %v136_v31 = vld [vmem:[%s506_s4 + $0x78] sm:$0xff] }
   0x8   :  { %343 = vmatpush3.bf16.msra.mxu0 %v342_v11  ;;  %v363_v29 = vpack.c.bf16 %v134_v28, %v133_v27  ;;  %v366_v32 = vpack.c.bf16 %v136_v31, %v135_v30  ;;  %v27_v33 = vld [vmem:[%s508_s1] sm:$0xff]  ;;  %s383_s1 = smov 124  }
   0x9   :  { %349 = vmatpush3.bf16.msra.mxu1 %v348_v13  ;;  %217 = vrot.lane.b32.xlu0 %v27_v33, %s382_s19  ;;  %v266_v34 = vld [vmem:[%s509_s3] ss:$0 sm:$0xff]  ;;  %v238_v62 = vmul.f32 %v27_v33, %v27_v33 }
   0xa   :  { %350 = vmatprep.subr.bf16.mxu1 %v379_v0  ;;  %v268_v39 = vld [vmem:[%s510_s5] ss:$0 sm:$0xff] }
   0xb   :  { %301 = vmatmul.mubr.msk.f32.vlgmr.msra.gmra.mrb[0].mxu0 %vm46_vm1, %v26_v16  ;;  %v265_v44 = vld [vmem:[%s511_s6] ss:$0 sm:$0xff]  ;;  %v239_v63 = vmul.f32 -0.5, %v238_v62 }
   0xd   :  { %352 = vmatpush3.bf16.msra.mxu1 %v351_v17 }
   0xe   :  { %353 = vmatprep.subr.bf16.mxu1 %v379_v0 }
  0x11   :  { %355 = vmatpush3.bf16.msra.mxu1 %v354_v20 }
  0x12   :  { %356 = vmatprep.subr.bf16.mxu1 %v379_v0 }
  0x15   :  { %358 = vmatpush3.bf16.msra.mxu1 %v357_v23 }
  0x16   :  { %359 = vmatprep.subr.bf16.mxu1 %v379_v0 }
  0x19   :  { %361 = vmatpush3.bf16.msra.mxu1 %v360_v26 }
  0x1a   :  { %362 = vmatprep.subr.bf16.mxu1 %v379_v0 }
  0x1d   :  { %364 = vmatpush3.bf16.msra.mxu1 %v363_v29 }
  0x1e   :  { %365 = vmatprep.subr.bf16.mxu1 %v379_v0 }
  0x21   :  { %367 = vmatpush3.bf16.msra.mxu1 %v366_v32 }
  0x7b   :  { %v218_v45 = vpop.permute.xlu0 %217 }
  0xde   :  { %v116_v35 = vpop.f32.mrb[0].mxu0 }
  0xdf   :  { %v117_v36 = vadd.f32 %v266_v34, %v116_v35  ;;  %v302_v37 = vpop.f32.mrb[1].mxu0 }
  0xe1   :  { %v120_v38 = vmax.f32 %v117_v36, 0.0 }
  0xe3   :  { %336 = vmatmul.mubr.f32.vlgmr.msra.gmra.mrb[0].mxu1 %v120_v38 }
 0x1b6   :  { %v210_v40 = vpop.f32.mrb[0].mxu1 }
 0x1b7   :  { %v211_v41 = vadd.f32 %v268_v39, %v210_v40  ;;  %v337_v42 = vpop.f32.mrb[1].mxu1 }
 0x1b9   :  { %v214_v43 = vmul.f32 1.442695, %v211_v41  ;;  %227 = vrot.lane.b32.xlu1 %v211_v41, %s382_s19 }
 0x1bb   :  { %373 = vpow2.f32 %v214_v43 }
 0x1bd   :  { %240 = vrot.lane.b32.xlu1 %v211_v41, %s383_s1 }
 0x1c1   :  { %234 = vrot.lane.b32.xlu1 %v265_v44, %s382_s19 }
 0x1c5   :  { %v374_v46 = vpop.eup %373 }
 0x1c6   :  { %v220_v47 = vmul.f32 %v374_v46, %v218_v45 }
 0x1c8   :  { %222 = vrot.lane.b32.xlu0 %v220_v47, %s383_s1 }
 0x22b   :  { %v228_v50 = vpop.permute.xlu1 %227 }
 0x22f   :  { %v241_v52 = vpop.permute.xlu1 %240 }
 0x230   :  { %v243_v0 = vsub.f32 %v239_v63, %v241_v52 }
 0x232   :  { %v269_v2 = vadd.f32 -0.9189385, %v243_v0 }
 0x233   :  { %v235_v53 = vpop.permute.xlu1 %234 }
 0x23a   :  { %v223_v48 = vpop.permute.xlu0 %222 }
 0x23b   :  { %v225_v49 = vadd.f32 %v223_v48, %v211_v41 }
 0x23d   :  { %v231_v51 = vsel %vm230_vm2, %v225_v49, %v228_v50 }
 0x23e   :  { %375 = vtanh.f32 %v231_v51 }
 0x248   :  { %v376_v54 = vpop.eup %375 }
 0x249   :  { %v237_v55 = vmul.f32 %v376_v54, %v235_v53  ;;  %v245_v56 = vmul.f32 %v376_v54, %v376_v54  ;;  %v233_v57 = vmul.f32 %v376_v54, %v265_v44 }
 0x24b   :  { %v246_v58 = vsub.f32 1.0, %v245_v56  ;;  %v255_v59 = vsel %vm230_vm2, %v233_v57, %v237_v55 }
 0x24d   :  { %v247_v60 = vmul.f32 %v265_v44, %v246_v58 }
 0x24f   :  { %v248_v61 = vadd.f32 1e-06, %v247_v60 }
 0x251   :  { %377 = vlog2.f32 %v248_v61 }
 0x25b   :  { %v378_v1 = vpop.eup %377 }
 0x25c   :  { %v250_v3 = vmul.f32 0.6931472, %v378_v1 }
 0x25e   :  { %v251_v4 = vsub.f32 %v269_v2, %v250_v3 }
 0x260   :  { %v252_v5 = vsel %vm230_vm2, %v251_v4, 0.0 }
 0x261   :  { %253 = vadd.xlane.f32.xlu0 %v252_v5 }
 0x2ee   :  { %v254_v6 = vpop.xlane.xlu0 %253 }
 0x2ef   :  { %v257_v7 = vsel %vm256_vm3, %v255_v59, %v254_v6 }
 0x2f0   :  { %v259_v8 = vsel %vm258_vm4, %v257_v7, 0.0 }
 0x2f1   :  { %260 = vst [vmem:[%s512_s7] sm:$0xff] %v259_v8 }

</bundles_post_ra>
